<compile_context>
chip_gen: v7x
topology: tpu7x:2x2x1
jax: 0.10.0
libtpu: 0.0.40
codegen_flags: <defaults>
</compile_context>

<pallas_src>
import functools

import jax
import jax.numpy as jnp
from jax.experimental import pallas as pl
from jax.experimental.pallas import tpu as pltpu


# ---------------------------------------------------------------------------
# Kernels
# ---------------------------------------------------------------------------

def _fused_tap_kernel(x_ref, w_ref, b_ref, o_ref, lhs_ref, *, offsets, m_out, c4):
    """Small-4C path: concat the 4 shifted windows in VMEM -> one K=16C GEMM.

    x_ref:  (1, M_in_t, 4C)   s2d rows of one tile (incl. 2-row halo), flattened
    w_ref:  (16C, OCp)        fused weight matrix (resident)
    b_ref:  (1, OCp)          f32 bias (resident, zero-padded)
    o_ref:  (1, M_out_t, OCp) output rows of the tile
    lhs_ref: VMEM (M_out_t, 16C) scratch for the fused LHS
    """
    for t, off in enumerate(offsets):          # 4 static taps (dh, dw) in {0,1}^2
        lhs_ref[:, t * c4:(t + 1) * c4] = x_ref[0, pl.ds(off, m_out), :]
    acc = jnp.dot(lhs_ref[...], w_ref[...], preferred_element_type=jnp.float32)
    o_ref[0] = (acc + b_ref[...]).astype(o_ref.dtype)


def _per_tap_kernel(x_ref, w_ref, b_ref, o_ref, acc_ref, *, offsets, m_out):
    """Large-4C path: 4 shifted GEMMs accumulated into a VMEM f32 scratch.

    x_ref:  (1, M_in_t, 4C);  w_ref: (4, 4C, OCp);  b_ref: (1, OCp) f32
    o_ref:  (1, M_out_t, OCp); acc_ref: VMEM (M_out_t, OCp) f32
    """
    acc_ref[...] = jnp.zeros_like(acc_ref)
    for t, off in enumerate(offsets):
        acc_ref[...] += jnp.dot(
            x_ref[0, pl.ds(off, m_out), :], w_ref[t],
            preferred_element_type=jnp.float32)
    o_ref[0] = (acc_ref[...] + b_ref[...]).astype(o_ref.dtype)


# ---------------------------------------------------------------------------
# Wrapper
# ---------------------------------------------------------------------------

def conv2d_block_forward(x, weight, bias, *, stride=2, padding=0,
                         compute_dtype=jnp.bfloat16, tile_rows=None):
    """Equivalent of conv2d_block.forward (nn.Conv2d kernel_size=4, stride=2).

    x:      (N, C, H, W) float32 (NCHW, like PyTorch)
    weight: (OC, C, 4, 4);  bias: (OC,)
    returns (N, OC, OH, OW) in x.dtype (f32 accumulation on the MXU).
    """
    N, C, H, W = x.shape
    OC, C_w, KH, KW = weight.shape
    assert C_w == C
    assert KH == 4 and KW == 4 and stride == 2, (
        "this kernel is specialized to the module's kernel_size=4, stride=2")

    # Cast early (halves the transpose traffic), fold padding into NHWC.
    x_nhwc = jnp.transpose(x.astype(compute_dtype), (0, 2, 3, 1))      # (N,H,W,C)
    if padding:
        x_nhwc = jnp.pad(
            x_nhwc, ((0, 0), (padding, padding), (padding, padding), (0, 0)))
    Hp, Wp = H + 2 * padding, W + 2 * padding

    OH = (Hp - KH) // stride + 1
    OW = (Wp - KW) // stride + 1
    assert OH > 0 and OW > 0
    Hs, Ws = OH + 1, OW + 1            # space-to-depth extent actually used
    He, We = 2 * Hs, 2 * Ws            # even-truncated input extent (<= Hp, Wp)
    C4, C16 = 4 * C, 16 * C
    OCp = pl.cdiv(OC, 128) * 128       # lane-dense output columns

    # ---- space-to-depth (single layout pass, no im2col blow-up) ----
    s2d = x_nhwc[:, :He, :We, :].reshape(N, Hs, 2, Ws, 2, C)
    s2d = s2d.transpose(0, 1, 3, 2, 4, 5).reshape(N, Hs, Ws, C4)       # (n,i,j,4C)

    fused = C4 < 128                   # small-K layers: fuse taps -> K=16C GEMM
    itemsize = jnp.dtype(compute_dtype).itemsize

    # ---- output-row tiling (bounds per-step VMEM; "parallel" for megacore) ----
    if tile_rows is None:
        per_row = Ws * (2 * C4 * itemsize            # input tile (x2 buffers)
                        + 2 * OCp * 4                # output tile f32 (x2 buffers)
                        + (C16 * itemsize if fused else OCp * 4))   # scratch
        tile_rows = max(1, (16 * 1024 * 1024) // max(per_row, 1))
    TH = int(min(int(tile_rows), OH))
    n_tiles = pl.cdiv(OH, TH)

    # Tile t needs s2d rows [t*TH, t*TH + TH + 2): duplicate the 2-row halo in
    # the wrapper so every grid step reads a simple contiguous block.
    rows_needed = n_tiles * TH + 2
    s2d = jnp.pad(s2d, ((0, 0), (0, rows_needed - Hs), (0, 0), (0, 0)))
    row_idx = jnp.arange(n_tiles)[:, None] * TH + jnp.arange(TH + 2)[None, :]
    x_tiles = s2d[:, row_idx]                         # (N, n_tiles, TH+2, Ws, 4C)

    M_in_t = (TH + 2) * Ws
    M_out_t = TH * Ws                  # OW real columns + 1 junk column per row
    G = N * n_tiles
    x_flat = x_tiles.reshape(G, M_in_t, C4)

    # ---- weights: per-tap matrices (4, 4C, OCp); tap t = 2*dh + dw, channel
    # index = (ph*2 + pw)*C + c (matches the s2d channel ordering). ----
    w6 = weight.reshape(OC, C, 2, 2, 2, 2)            # (oc, c, dh, ph, dw, pw)
    w_taps = jnp.transpose(w6, (2, 4, 3, 5, 1, 0)).reshape(4, C4, OC)
    w_taps = jnp.pad(w_taps, ((0, 0), (0, 0), (0, OCp - OC))).astype(compute_dtype)
    b_pad = jnp.pad(bias.astype(jnp.float32), (0, OCp - OC)).reshape(1, OCp)

    offsets = (0, 1, Ws, Ws + 1)       # flat tile offsets of the 4 taps (dh*Ws+dw)

    if fused:
        kernel = functools.partial(_fused_tap_kernel, offsets=offsets,
                                   m_out=M_out_t, c4=C4)
        w_arg = w_taps.reshape(C16, OCp)              # concat taps along K
        w_spec = pl.BlockSpec((C16, OCp), lambda g: (0, 0))
        scratch = [pltpu.VMEM((M_out_t, C16), compute_dtype)]
    else:
        kernel = functools.partial(_per_tap_kernel, offsets=offsets, m_out=M_out_t)
        w_arg = w_taps
        w_spec = pl.BlockSpec((4, C4, OCp), lambda g: (0, 0, 0))
        scratch = [pltpu.VMEM((M_out_t, OCp), jnp.float32)]

    cost = pl.CostEstimate(
        flops=2 * G * M_out_t * C16 * OCp,
        transcendentals=0,
        bytes_accessed=(x_flat.size * itemsize + w_arg.size * itemsize
                        + b_pad.size * 4 + G * M_out_t * OCp * 4))

    out = pl.pallas_call(
        kernel,
        out_shape=jax.ShapeDtypeStruct((G, M_out_t, OCp), x.dtype),
        grid_spec=pltpu.PrefetchScalarGridSpec(
            num_scalar_prefetch=0,
            grid=(G,),
            in_specs=[
                pl.BlockSpec((1, M_in_t, C4), lambda g: (g, 0, 0)),   # row tile
                w_spec,                                               # resident
                pl.BlockSpec((1, OCp), lambda g: (0, 0)),             # resident
            ],
            out_specs=pl.BlockSpec((1, M_out_t, OCp), lambda g: (g, 0, 0)),
            scratch_shapes=scratch,
        ),
        compiler_params=pltpu.CompilerParams(
            dimension_semantics=("parallel",),
            vmem_limit_bytes=48 * 1024 * 1024),
        cost_estimate=cost,
    )(x_flat, w_arg, b_pad)

    # Drop junk rows/column and OC padding, back to NCHW.
    out = out.reshape(N, n_tiles * TH, Ws, OCp)[:, :OH, :OW, :OC]
    return jnp.transpose(out, (0, 3, 1, 2))


# ---------------------------------------------------------------------------
# Test utilities
# ---------------------------------------------------------------------------

def init_conv2d_block_params(key, input_dim, output_dim, kernel_size=4):
    """Deterministic synthetic init (shapes match nn.Conv2d(input_dim, output_dim, k))."""
    kw_key, kb_key = jax.random.split(key)
    fan_in = input_dim * kernel_size * kernel_size
    bound = 1.0 / jnp.sqrt(fan_in)
    weight = jax.random.uniform(
        kw_key, (output_dim, input_dim, kernel_size, kernel_size),
        dtype=jnp.float32, minval=-bound, maxval=bound)
    bias = jax.random.uniform(
        kb_key, (output_dim,), dtype=jnp.float32, minval=-bound, maxval=bound)
    return weight, bias


def _reference_conv(x, weight, bias, stride, padding):
    out = jax.lax.conv_general_dilated(
        x, weight, window_strides=(stride, stride),
        padding=[(padding, padding), (padding, padding)],
        dimension_numbers=("NCHW", "OIHW", "NCHW"),
        precision=jax.lax.Precision.HIGHEST)
    return out + bias[None, :, None, None]


if __name__ == "__main__":
    key = jax.random.PRNGKey(0)
    x_key, p_key, x2_key, p2_key = jax.random.split(key, 4)

    # ---- Case 1: small first-layer-like shape (4C < 128 -> fused K=16C path) ----
    N, C, H, W, OC = 2, 4, 16, 16, 8
    x = jax.random.normal(x_key, (N, C, H, W), dtype=jnp.float32)
    weight, bias = init_conv2d_block_params(p_key, C, OC, kernel_size=4)

    fwd = jax.jit(functools.partial(conv2d_block_forward, stride=2, padding=0))
    out = jax.block_until_ready(fwd(x, weight, bias))

    ref = _reference_conv(x, weight, bias, 2, 0)
    assert out.shape == ref.shape == (N, OC, 7, 7), (out.shape, ref.shape)
    # bf16 inputs / f32 accumulation: compare against a bf16-rounded-input reference.
    ref_bf = _reference_conv(x.astype(jnp.bfloat16).astype(jnp.float32),
                             weight.astype(jnp.bfloat16).astype(jnp.float32),
                             bias, 2, 0)
    assert jnp.allclose(out, ref_bf, atol=1e-2, rtol=1e-2), "bf16 path mismatch"

    # Exactness of the layout / halo / row-tiling logic (f32 compute, forced tiles).
    fwd_f32 = jax.jit(functools.partial(conv2d_block_forward,
                                        compute_dtype=jnp.float32, tile_rows=3))
    out_f32 = jax.block_until_ready(fwd_f32(x, weight, bias))
    assert jnp.allclose(out_f32, ref, atol=1e-4, rtol=1e-4), "f32 tiled mismatch"

    # ---- Case 2: 4C >= 128 -> per-tap GEMM path, multi-tile with halo ----
    N2, C2, H2, W2, OC2 = 1, 40, 14, 12, 16
    x2 = jax.random.normal(x2_key, (N2, C2, H2, W2), dtype=jnp.float32)
    weight2, bias2 = init_conv2d_block_params(p2_key, C2, OC2, kernel_size=4)
    fwd2 = jax.jit(functools.partial(conv2d_block_forward,
                                     compute_dtype=jnp.float32, tile_rows=2))
    out2 = jax.block_until_ready(fwd2(x2, weight2, bias2))
    ref2 = _reference_conv(x2, weight2, bias2, 2, 0)
    assert out2.shape == ref2.shape == (N2, OC2, 6, 5), (out2.shape, ref2.shape)
    assert jnp.allclose(out2, ref2, atol=1e-4, rtol=1e-4), "per-tap path mismatch"

    print("KERNEL_OK")
</pallas_src>

<mosaic_0001>
module attributes {stable_mosaic.version = 11 : i64} {
  func.func @_fused_tap_kernel(%arg0: i32, %arg1: memref<1x72x16xbf16, #tpu.memory_space<vmem>>, %arg2: memref<64x128xbf16, #tpu.memory_space<vmem>>, %arg3: memref<1x128xf32, #tpu.memory_space<vmem>>, %arg4: memref<1x56x128xf32, #tpu.memory_space<vmem>>, %arg5: memref<56x64xbf16, #tpu.memory_space<vmem>>) attributes {dimension_semantics = [#tpu.dimension_semantics<parallel>], iteration_bounds = array<i64: 2>, scalar_prefetch = 0 : i64, scratch_operands = 1 : i64, tpu.core_type = #tpu.core_type<tc>, window_params = [{transform_indices = @transform_0, window_bounds = array<i64: 1, 72, 16>}, {pipeline_mode = #tpu.pipeline_mode<synchronous>, transform_indices = @transform_1, window_bounds = array<i64: 64, 128>}, {pipeline_mode = #tpu.pipeline_mode<synchronous>, transform_indices = @transform_2, window_bounds = array<i64: 1, 128>}, {transform_indices = @transform_3, window_bounds = array<i64: 1, 56, 128>}]} {
    %c0 = arith.constant 0 : index
    %c0_0 = arith.constant 0 : index
    %c0_1 = arith.constant 0 : index
    %0 = vector.load %arg1[%c0, %c0_0, %c0_1] : memref<1x72x16xbf16, #tpu.memory_space<vmem>>, vector<1x56x16xbf16>
    %1 = vector.shape_cast %0 : vector<1x56x16xbf16> to vector<56x16xbf16>
    %c0_2 = arith.constant 0 : index
    %c0_3 = arith.constant 0 : index
    %2 = vector.load %arg5[%c0_2, %c0_3] : memref<56x64xbf16, #tpu.memory_space<vmem>>, vector<56x16xbf16>
    tpu.vector_store %arg5[%c0_2, %c0_3], %1 {strides = array<i32>} : memref<56x64xbf16, #tpu.memory_space<vmem>>, vector<56x16xbf16>,
    %c0_4 = arith.constant 0 : index
    %c1 = arith.constant 1 : index
    %c0_5 = arith.constant 0 : index
    %3 = vector.load %arg1[%c0_4, %c1, %c0_5] : memref<1x72x16xbf16, #tpu.memory_space<vmem>>, vector<1x56x16xbf16>
    %4 = vector.shape_cast %3 : vector<1x56x16xbf16> to vector<56x16xbf16>
    %c0_6 = arith.constant 0 : index
    %c16 = arith.constant 16 : index
    %5 = vector.load %arg5[%c0_6, %c16] : memref<56x64xbf16, #tpu.memory_space<vmem>>, vector<56x16xbf16>
    tpu.vector_store %arg5[%c0_6, %c16], %4 {strides = array<i32>} : memref<56x64xbf16, #tpu.memory_space<vmem>>, vector<56x16xbf16>,
    %c0_7 = arith.constant 0 : index
    %c8 = arith.constant 8 : index
    %c0_8 = arith.constant 0 : index
    %6 = vector.load %arg1[%c0_7, %c8, %c0_8] : memref<1x72x16xbf16, #tpu.memory_space<vmem>>, vector<1x56x16xbf16>
    %7 = vector.shape_cast %6 : vector<1x56x16xbf16> to vector<56x16xbf16>
    %c0_9 = arith.constant 0 : index
    %c32 = arith.constant 32 : index
    %8 = vector.load %arg5[%c0_9, %c32] : memref<56x64xbf16, #tpu.memory_space<vmem>>, vector<56x16xbf16>
    tpu.vector_store %arg5[%c0_9, %c32], %7 {strides = array<i32>} : memref<56x64xbf16, #tpu.memory_space<vmem>>, vector<56x16xbf16>,
    %c0_10 = arith.constant 0 : index
    %c9 = arith.constant 9 : index
    %c0_11 = arith.constant 0 : index
    %9 = vector.load %arg1[%c0_10, %c9, %c0_11] : memref<1x72x16xbf16, #tpu.memory_space<vmem>>, vector<1x56x16xbf16>
    %10 = vector.shape_cast %9 : vector<1x56x16xbf16> to vector<56x16xbf16>
    %c0_12 = arith.constant 0 : index
    %c48 = arith.constant 48 : index
    %11 = vector.load %arg5[%c0_12, %c48] : memref<56x64xbf16, #tpu.memory_space<vmem>>, vector<56x16xbf16>
    tpu.vector_store %arg5[%c0_12, %c48], %10 {strides = array<i32>} : memref<56x64xbf16, #tpu.memory_space<vmem>>, vector<56x16xbf16>,
    %c0_13 = arith.constant 0 : index
    %c0_14 = arith.constant 0 : index
    %12 = vector.load %arg5[%c0_13, %c0_14] : memref<56x64xbf16, #tpu.memory_space<vmem>>, vector<56x64xbf16>
    %c0_15 = arith.constant 0 : index
    %c0_16 = arith.constant 0 : index
    %13 = vector.load %arg2[%c0_15, %c0_16] : memref<64x128xbf16, #tpu.memory_space<vmem>>, vector<64x128xbf16>
    %cst = arith.constant dense<0.000000e+00> : vector<56x128xf32>
    %14 = tpu.matmul %12, %13, %cst {dimension_numbers = #tpu.dot_dimension_numbers<[1], [0], [0], [1], [0, 0, 1, 1], [], []>} : vector<56x64xbf16>, vector<64x128xbf16>, vector<56x128xf32> -> vector<56x128xf32>
    %c0_17 = arith.constant 0 : index
    %c0_18 = arith.constant 0 : index
    %15 = vector.load %arg3[%c0_17, %c0_18] : memref<1x128xf32, #tpu.memory_space<vmem>>, vector<1x128xf32>
    %16 = vector.broadcast %15 : vector<1x128xf32> to vector<56x128xf32>
    %17 = arith.addf %14, %16 : vector<56x128xf32>
    %c0_19 = arith.constant 0 : index
    %c0_20 = arith.constant 0 : index
    %c0_21 = arith.constant 0 : index
    %18 = vector.load %arg4[%c0_19, %c0_20, %c0_21] : memref<1x56x128xf32, #tpu.memory_space<vmem>>, vector<1x56x128xf32>
    %19 = vector.shape_cast %18 : vector<1x56x128xf32> to vector<56x128xf32>
    %20 = vector.shape_cast %17 : vector<56x128xf32> to vector<1x56x128xf32>
    tpu.vector_store %arg4[%c0_19, %c0_20, %c0_21], %20 {strides = array<i32>} : memref<1x56x128xf32, #tpu.memory_space<vmem>>, vector<1x56x128xf32>,
    return
  }
  func.func @transform_0(%arg0: i32) -> (i32, i32, i32) {
    %c0_i32 = arith.constant 0 : i32
    %c0_i32_0 = arith.constant 0 : i32
    %c0_i32_1 = arith.constant 0 : i32
    return %arg0, %c0_i32, %c0_i32_0 : i32, i32, i32
  }
  func.func @transform_1(%arg0: i32) -> (i32, i32) {
    %c0_i32 = arith.constant 0 : i32
    %c0_i32_0 = arith.constant 0 : i32
    %c0_i32_1 = arith.constant 0 : i32
    return %c0_i32, %c0_i32_0 : i32, i32
  }
  func.func @transform_2(%arg0: i32) -> (i32, i32) {
    %c0_i32 = arith.constant 0 : i32
    %c0_i32_0 = arith.constant 0 : i32
    %c0_i32_1 = arith.constant 0 : i32
    return %c0_i32, %c0_i32_0 : i32, i32
  }
  func.func @transform_3(%arg0: i32) -> (i32, i32, i32) {
    %c0_i32 = arith.constant 0 : i32
    %c0_i32_0 = arith.constant 0 : i32
    %c0_i32_1 = arith.constant 0 : i32
    return %arg0, %c0_i32, %c0_i32_0 : i32, i32, i32
  }
}

</mosaic_0001>

<bundles_post_ra>
// kernel: conv2d_block_forward.1
= control target key start
LH: loop header
LB: loop body
LE: loop exit
PB: predicated region body
PF: predicated region fallthrough
CT: control target
= control target key end

     0   :  { %s764_s12 = smov 0   ;;  %s931_s0 = inlined_call_operand.vmem [shape: bf16[2,72,16], index: 0, kind: input, shape index: {}]   ;;  %s932_s1 = inlined_call_operand.vmem [shape: bf16[64,128], index: 1, kind: input, shape index: {}]   ;;  %s933_s2 = inlined_call_operand.vmem [shape: f32[1,128], index: 2, kind: input, shape index: {}]   ;;  %s934_s3 = inlined_call_operand.vmem [shape: f32[2,56,128], index: 3, kind: output, shape index: {}]  }
   0x1 LB: > { %s658_s13 = sadd.s32 4294967295, %s739_s12   ;;  %p662_p0 = scmp.ge.s32.totalorder %s739_s12, 1  ;;  %s739_s12 = sphi %s764_s12, %s13_s12  }
   0x2   : > { %p137_p1 = scmp.lt.s32.totalorder %s739_s12, 3 }
   0x4   : > { %p138_p2 = pnand %p662_p0, %p137_p1 }
   0x5   : > { %p161_p3 = scmp.lt.s32.totalorder (!%p138_p2), %s658_s13, 1  ;;  %vm195_vm0 = vsmask.f32 (!%p138_p2), 3328  ;;  %s741_s18 = smov (!%p138_p2), 32   ;;  %vm196_vm1 = vsmask.f32 (!%p138_p2), 7440 }
   0x6   : > { %141 = sbr.rel (%p138_p2) target bundleno = 405 (0x195), region = 32  ;;  %vm179_vm2 = vcmask (!%p138_p2), 125952   ;;  %vm796_vm3 = vmor (!%p138_p2), %vm195_vm0, %vm196_vm1  ;;  %s742_s19 = smov (!%p138_p2), 16   ;;  %vm293_vm4 = vcmask (!%p138_p2), 257152   ;;  %vm336_vm5 = vcmask (!%p138_p2), 388352   ;;  %vm447_vm6 = vcmask (!%p138_p2), 519552  }
   0x7   : > { %s743_s26 = smov (!%p138_p2), 48   ;;  %vm519_vm7 = vcmask (!%p138_p2), 523264  }
   0xd   : > { %s938_s13 = smov (!%p161_p3, %s658_s13), 1 }
   0xe   : > { %s712_s14 = smul.u32 36, %s938_s13 }
   0xf   : > { %s713_s29 = smul.u32 56, %s938_s13 }
  0x10   : > { %s778_s17 = scalar_lea.vmem %s931_s0, %s712_s14 }
  0x11   : > { %v301_v0 = vld [vmem:[%s778_s17 + $0x4] sm:$0xf]  ;;  %v302_v1 = vld [vmem:[%s778_s17 + $0x8] sm:$0xf]  ;;  %v305_v2 = vld [vmem:[%s778_s17 + $0x14] sm:$0xf]  ;;  %s170_s7 = scalar_lea.vmem %s934_s3, %s713_s29 }
  0x12   : > { %315 = vrot.lane.b32.xlu1 %v301_v0, %s741_s18  ;;  %317 = vrot.lane.b32.xlu0 %v302_v1, %s741_s18  ;;  %v187_v3 = vld [vmem:[%s778_s17] sm:$0xf]  ;;  %v188_v4 = vld [vmem:[%s778_s17 + $0x4] sm:$0xf] }
  0x13   : > { %v199_v5 = vshrl.u32 %v187_v3, 16  ;;  %v202_v6 = vshll.u32 %v187_v3, 16  ;;  %v208_v7 = vshll.u32 %v188_v4, 16  ;;  %v212_v8 = vshrl.u32 %v188_v4, 16  ;;  %v191_v9 = vld [vmem:[%s778_s17 + $0x10] sm:$0xf] }
  0x14   : > { %v192_v10 = vld [vmem:[%s778_s17 + $0x14] sm:$0xf]  ;;  %v238_v11 = vshll.u32 %v191_v9, 16  ;;  %v242_v12 = vshrl.u32 %v191_v9, 16  ;;  %v189_v13 = vld [vmem:[%s778_s17 + $0x8] sm:$0xf] }
  0x15   : > { %v201_v14 = vrot.slane %v199_v5, 4  ;;  %v204_v15 = vrot.slane %v202_v6, 5  ;;  %v210_v16 = vrot.slane %v208_v7, 5  ;;  %v248_v17 = vshll.u32 %v192_v10, 16  ;;  %v193_v18 = vld [vmem:[%s778_s17 + $0x18] sm:$0xf] }
  0x16   : > { %323 = vrot.lane.b32.xlu1 %v305_v2, %s741_s18  ;;  %v792_v19 = vrot.slane %v238_v11, 5  ;;  %v244_v20 = vrot.slane %v242_v12, 4  ;;  %v252_v21 = vshrl.u32 %v192_v10, 16  ;;  %v214_v22 = vrot.slane %v212_v8, 4  ;;  %v190_v32 = vld [vmem:[%s778_s17 + $0xc] sm:$0xf] }
  0x17   : > { %v205_v23 = vor.u32 %v204_v15, %v201_v14  ;;  %v250_v24 = vrot.slane %v248_v17, 5  ;;  %v218_v25 = vshll.u32 %v189_v13, 16  ;;  %v222_v26 = vshrl.u32 %v189_v13, 16  ;;  %v194_v41 = vld [vmem:[%s778_s17 + $0x1c] sm:$0x1] }
  0x18   : > { %v245_v28 = vor.u32 %v244_v20, %v792_v19  ;;  %v215_v29 = vor.u32 %v214_v22, %v210_v16  ;;  %v254_v30 = vrot.slane %v252_v21, 4  ;;  %v258_v31 = vshll.u32 %v193_v18, 16  ;;  %v345_v46 = vld [vmem:[%s778_s17 + $0x8] sm:$0xf]  ;;  %v344_v59 = vld [vmem:[%s778_s17 + $0x4] sm:$0xf] }
  0x19   : > { %v206_v33 = vrot.slane %v205_v23, 4  ;;  %v220_v34 = vrot.slane %v218_v25, 5  ;;  %v262_v35 = vshrl.u32 %v193_v18, 16  ;;  %v224_v36 = vrot.slane %v222_v26, 4  ;;  %v816_v61 = vld [vmem:[%s778_s17 + $0xc] sm:$0xf] }
  0x1a   : > { %v246_v37 = vrot.slane %v245_v28, 4  ;;  %v216_v38 = vrot.slane %v215_v29, 4  ;;  %v255_v39 = vor.u32 %v254_v30, %v250_v24  ;;  %v260_v40 = vrot.slane %v258_v31, 5  ;;  %v349_v62 = vld [vmem:[%s778_s17 + $0x18] sm:$0xf] }
  0x1b   : > { %v211_v42 = vsel %vm796_vm3, %v206_v33, %v210_v16  ;;  %v225_v43 = vor.u32 %v224_v36, %v220_v34  ;;  %v228_v44 = vshll.u32 %v190_v32, 16  ;;  %v232_v45 = vshrl.u32 %v190_v32, 16  ;;  %v172_v63 = vld [vmem:[%s778_s17] sm:$0xf]  ;;  %v348_v4 = vld [vmem:[%s778_s17 + $0x14] sm:$0xf] }
  0x1c   : > { %272 = vrot.lane.b32.xlu0 %v211_v42, %s742_s19  ;;  %v251_v47 = vsel %vm796_vm3, %v246_v37, %v250_v24  ;;  %v221_v48 = vsel %vm796_vm3, %v216_v38, %v220_v34  ;;  %v256_v49 = vrot.slane %v255_v39, 4  ;;  %v264_v50 = vrot.slane %v262_v35, 4  ;;  %180 = vst.msk [vmem:[#allocation2] sm:$0xf] %vm179_vm2, %v172_v63  ;;  %v176_v5 = vld [vmem:[%s778_s17 + $0x10] sm:$0xf] }
  0x1d   : > { %280 = vrot.lane.b32.xlu1 %v251_v47, %s742_s19  ;;  %v226_v51 = vrot.slane %v225_v43, 4  ;;  %v230_v52 = vrot.slane %v228_v44, 5  ;;  %v234_v53 = vrot.slane %v232_v45, 4  ;;  %v268_v54 = vshll.u32 %v194_v41, 16  ;;  %184 = vst.msk [vmem:[#allocation2 + $0x10] sm:$0xf] %vm179_vm2, %v176_v5 }
  0x1e   : > { %v261_v55 = vsel %vm796_vm3, %v256_v49, %v260_v40  ;;  %v265_v56 = vor.u32 %v264_v50, %v260_v40  ;;  %v362_v57 = vshll.u32 %v345_v46, 16  ;;  %v366_v58 = vshrl.u32 %v345_v46, 16  ;;  %v173_v10 = vld [vmem:[%s778_s17 + $0x4] sm:$0xf]  ;;  %v177_v13 = vld [vmem:[%s778_s17 + $0x14] sm:$0xf] }
  0x1f   : > { %v235_v60 = vor.u32 %v234_v53, %v230_v52  ;;  %v270_v1 = vrot.slane %v268_v54, 5  ;;  %v231_v6 = vsel %vm796_vm3, %v226_v51, %v230_v52  ;;  %v353_v8 = vshrl.u32 %v344_v59, 16  ;;  %181 = vst.msk [vmem:[#allocation2 + $0x4] sm:$0xf] %vm179_vm2, %v173_v10  ;;  %v174_v14 = vld [vmem:[%s778_s17 + $0x8] sm:$0xf] }
  0x20   : > { %274 = vrot.lane.b32.xlu0 %v221_v48, %s742_s19  ;;  %v266_v0 = vrot.slane %v265_v56, 4  ;;  %v821_v2 = vrot.slane %v362_v57, 5  ;;  %v368_v3 = vrot.slane %v366_v58, 4  ;;  %v356_v9 = vshll.u32 %v344_v59, 16  ;;  %v347_v16 = vld [vmem:[%s778_s17 + $0x10] sm:$0xf] }
  0x21   : > { %282 = vrot.lane.b32.xlu1 %v261_v55, %s742_s19  ;;  %v236_v7 = vrot.slane %v235_v60, 4  ;;  %v402_v11 = vshll.u32 %v349_v62, 16  ;;  %v406_v12 = vshrl.u32 %v349_v62, 16  ;;  %185 = vst.msk [vmem:[#allocation2 + $0x14] sm:$0xf] %vm179_vm2, %v177_v13  ;;  %v372_v22 = vshll.u32 %v816_v61, 16 }
  0x22   : > { %182 = vst.msk [vmem:[#allocation2 + $0x8] sm:$0xf] %vm179_vm2, %v174_v14  ;;  %v175_v17 = vld [vmem:[%s778_s17 + $0xc] sm:$0xf]  ;;  %v271_v18 = vsel %vm796_vm3, %v266_v0, %v270_v1  ;;  %v369_v21 = vor.u32 %v368_v3, %v821_v2  ;;  %v178_v23 = vld [vmem:[%s778_s17 + $0x18] sm:$0xf] }
  0x23   : > { %v241_v15 = vsel %vm796_vm3, %v236_v7, %v792_v19  ;;  %v303_v20 = vld [vmem:[%s778_s17 + $0xc] sm:$0xf]  ;;  %183 = vst.msk [vmem:[#allocation2 + $0xc] sm:$0xf] %vm179_vm2, %v175_v17  ;;  %v355_v19 = vrot.slane %v353_v8, 4  ;;  %v358_v24 = vrot.slane %v356_v9, 5 }
  0x24   : > { %276 = vrot.lane.b32.xlu0 %v231_v6, %s742_s19  ;;  %v350_v25 = vld [vmem:[%s778_s17 + $0x1c] sm:$0xf]  ;;  %v392_v26 = vshll.u32 %v348_v4, 16  ;;  %v396_v28 = vshrl.u32 %v348_v4, 16  ;;  %186 = vst.msk [vmem:[#allocation2 + $0x18] sm:$0xf] %vm179_vm2, %v178_v23 }
  0x25   : > { %278 = vrot.lane.b32.xlu1 %v241_v15, %s742_s19  ;;  %v852_v29 = vrot.slane %v402_v11, 5  ;;  %v408_v30 = vrot.slane %v406_v12, 4  ;;  %v382_v31 = vshll.u32 %v347_v16, 16  ;;  %v386_v32 = vshrl.u32 %v347_v16, 16  ;;  %v725_v33 = vld [vmem:[%s932_s1] sm:$0xff]   ;;  %v726_v46 = vld [vmem:[%s932_s1 + $0x8] sm:$0xff]  }
  0x26   : > { %v374_v34 = vrot.slane %v372_v22, 5  ;;  %v376_v35 = vshrl.u32 %v816_v61, 16  ;;  %688 = vmatprep.subr.bf16.mxu0 %v725_v33  ;;  %v306_v36 = vld [vmem:[%s778_s17 + $0x18] sm:$0xf]  ;;  %v359_v37 = vor.u32 %v358_v24, %v355_v19  ;;  %v412_v38 = vshll.u32 %v350_v25, 16  ;;  %704 = vmatprep.subr.bf16.mxu1 %v725_v33  ;;  %v727_v56 = vld [vmem:[%s932_s1 + $0x10] sm:$0xff]  }
  0x27   : > { %v394_v39 = vrot.slane %v392_v26, 5  ;;  %v398_v40 = vrot.slane %v396_v28, 4  ;;  %689 = vmatpush3.bf16.msra.mxu0 %v725_v33  ;;  %v307_v41 = vld [vmem:[%s778_s17 + $0x1c] sm:$0xf]  ;;  %v370_v42 = vrot.slane %v369_v21, 4  ;;  %v409_v43 = vor.u32 %v408_v30, %v852_v29  ;;  %708 = vmatpush3.bf16.msra.mxu1 %v725_v33 }
  0x28   : > { %284 = vrot.lane.b32.xlu0 %v271_v18, %s742_s19  ;;  %v384_v44 = vrot.slane %v382_v31, 5  ;;  %v388_v45 = vrot.slane %v386_v32, 4  ;;  %690 = vmatprep.subr.bf16.mxu0 %v726_v46  ;;  %v304_v47 = vld [vmem:[%s778_s17 + $0x10] sm:$0xf]  ;;  %v360_v48 = vrot.slane %v359_v37, 4  ;;  %v416_v49 = vshrl.u32 %v350_v25, 16 }
  0x29   : > { %319 = vrot.lane.b32.xlu1 %v303_v20, %s741_s18  ;;  %v399_v50 = vor.u32 %v398_v40, %v394_v39  ;;  %v378_v51 = vrot.slane %v376_v35, 4  ;;  %v375_v52 = vsel %vm796_vm3, %v370_v42, %v374_v34  ;;  %v410_v53 = vrot.slane %v409_v43, 4  ;;  %705 = vmatprep.subr.bf16.mxu1 %v726_v46  ;;  %v351_v63 = vld [vmem:[%s778_s17 + $0x20] sm:$0x1]  ;;  %v729_v0 = vld [vmem:[%s932_s1 + $0x18] sm:$0xff]  }
  0x2a   : > { %v414_v54 = vrot.slane %v412_v38, 5  ;;  %v389_v55 = vor.u32 %v388_v45, %v384_v44  ;;  %v365_v57 = vsel %vm796_vm3, %v360_v48, %v821_v2  ;;  %v418_v60 = vrot.slane %v416_v49, 4  ;;  %v665_v35 = vld [vmem:[%s933_s2] ss:$0 sm:$0xff] }
  0x2b   : > { %691 = vmatpush3.bf16.msra.mxu0 %v726_v46  ;;  %709 = vmatpush3.bf16.msra.mxu1 %v726_v46  ;;  %v400_v58 = vrot.slane %v399_v50, 4  ;;  %v379_v59 = vor.u32 %v378_v51, %v374_v34  ;;  %v422_v4 = vshll.u32 %v351_v63, 16 }
  0x2c   : > { %325 = vrot.lane.b32.xlu0 %v306_v36, %s741_s18  ;;  %692 = vmatprep.subr.bf16.mxu0 %v727_v56  ;;  %v415_v61 = vsel %vm796_vm3, %v410_v53, %v414_v54  ;;  %v390_v62 = vrot.slane %v389_v55, 4  ;;  %v419_v3 = vor.u32 %v418_v60, %v414_v54 }
  0x2d   : > { %327 = vrot.lane.b32.xlu1 %v307_v41, %s741_s18  ;;  %706 = vmatprep.subr.bf16.mxu1 %v727_v56  ;;  %v405_v1 = vsel %vm796_vm3, %v400_v58, %v852_v29  ;;  %v380_v2 = vrot.slane %v379_v59, 4  ;;  %v424_v8 = vrot.slane %v422_v4, 5 }
  0x2e   : > { %v395_v5 = vsel %vm796_vm3, %v390_v62, %v394_v39  ;;  %v420_v7 = vrot.slane %v419_v3, 4 }
  0x2f   : > { %693 = vmatpush3.bf16.msra.mxu0 %v727_v56  ;;  %710 = vmatpush3.bf16.msra.mxu1 %v727_v56  ;;  %v385_v6 = vsel %vm796_vm3, %v380_v2, %v384_v44 }
  0x30   : > { %321 = vrot.lane.b32.xlu0 %v304_v47, %s741_s18  ;;  %694 = vmatprep.subr.bf16.mxu0 %v729_v0  ;;  %v425_v9 = vsel %vm796_vm3, %v420_v7, %v424_v8 }
  0x31   : > { %428 = vrot.lane.b32.xlu1 %v375_v52, %s743_s26  ;;  %707 = vmatprep.subr.bf16.mxu1 %v729_v0 }
  0x33   : > { %695 = vmatpush3.bf16.msra.mxu0 %v729_v0  ;;  %711 = vmatpush3.bf16.msra.mxu1 %v729_v0 }
  0x34   : > { %426 = vrot.lane.b32.xlu0 %v365_v57, %s743_s26 }
  0x35   : > { %436 = vrot.lane.b32.xlu1 %v415_v61, %s743_s26 }
  0x38   : > { %434 = vrot.lane.b32.xlu0 %v405_v1, %s743_s26 }
  0x39   : > { %432 = vrot.lane.b32.xlu1 %v395_v5, %s743_s26 }
  0x3c   : > { %430 = vrot.lane.b32.xlu0 %v385_v6, %s743_s26 }
  0x40   : > { %438 = vrot.lane.b32.xlu0 %v425_v9, %s743_s26 }
  0x84   : > { %v316_v10 = vpop.permute.xlu1 %315  ;;  %v318_v11 = vpop.permute.xlu0 %317 }
  0x88   : > { %v324_v12 = vpop.permute.xlu1 %323 }
  0x8e   : > { %v273_v13 = vpop.permute.xlu0 %272 }
  0x8f   : > { %294 = vst.msk [vmem:[#allocation2] sm:$0xf] %vm293_vm4, %v273_v13  ;;  %v281_v14 = vpop.permute.xlu1 %280 }
  0x90   : > { %298 = vst.msk [vmem:[#allocation2 + $0x10] sm:$0xf] %vm293_vm4, %v281_v14 }
  0x91   : > { %337 = vst.msk [vmem:[#allocation2] sm:$0xf] %vm336_vm5, %v316_v10  ;;  %341 = vst.msk [vmem:[#allocation2 + $0x10] sm:$0xf] %vm336_vm5, %v324_v12 }
  0x92   : > { %v275_v15 = vpop.permute.xlu0 %274 }
  0x93   : > { %295 = vst.msk [vmem:[#allocation2 + $0x4] sm:$0xf] %vm293_vm4, %v275_v15  ;;  %v283_v27 = vpop.permute.xlu1 %282 }
  0x94   : > { %299 = vst.msk [vmem:[#allocation2 + $0x14] sm:$0xf] %vm293_vm4, %v283_v27 }
  0x95   : > { %338 = vst.msk [vmem:[#allocation2 + $0x4] sm:$0xf] %vm336_vm5, %v318_v11 }
  0x96   : > { %v277_v16 = vpop.permute.xlu0 %276 }
  0x97   : > { %296 = vst.msk [vmem:[#allocation2 + $0x8] sm:$0xf] %vm293_vm4, %v277_v16  ;;  %v279_v17 = vpop.permute.xlu1 %278 }
  0x98   : > { %297 = vst.msk [vmem:[#allocation2 + $0xc] sm:$0xf] %vm293_vm4, %v279_v17 }
  0x9a   : > { %v285_v18 = vpop.permute.xlu0 %284 }
  0x9b   : > { %300 = vst.msk [vmem:[#allocation2 + $0x18] sm:$0xf] %vm293_vm4, %v285_v18  ;;  %v320_v20 = vpop.permute.xlu1 %319 }
  0x9c   : > { %339 = vst.msk [vmem:[#allocation2 + $0x8] sm:$0xf] %vm336_vm5, %v320_v20 }
  0x9e   : > { %v326_v21 = vpop.permute.xlu0 %325 }
  0x9f   : > { %342 = vst.msk [vmem:[#allocation2 + $0x14] sm:$0xf] %vm336_vm5, %v326_v21  ;;  %v328_v22 = vpop.permute.xlu1 %327 }
  0xa0   : > { %343 = vst.msk [vmem:[#allocation2 + $0x18] sm:$0xf] %vm336_vm5, %v328_v22 }
  0xa2   : > { %v322_v23 = vpop.permute.xlu0 %321 }
  0xa3   : > { %340 = vst.msk [vmem:[#allocation2 + $0xc] sm:$0xf] %vm336_vm5, %v322_v23  ;;  %v429_v19 = vpop.permute.xlu1 %428 }
  0xa4   : > { %449 = vst.msk [vmem:[#allocation2 + $0x4] sm:$0xf] %vm447_vm6, %v429_v19 }
  0xa6   : > { %v427_v24 = vpop.permute.xlu0 %426 }
  0xa7   : > { %448 = vst.msk [vmem:[#allocation2] sm:$0xf] %vm447_vm6, %v427_v24  ;;  %v437_v25 = vpop.permute.xlu1 %436 }
  0xa8   : > { %453 = vst.msk [vmem:[#allocation2 + $0x14] sm:$0xf] %vm447_vm6, %v437_v25 }
  0xaa   : > { %v435_v26 = vpop.permute.xlu0 %434 }
  0xab   : > { %452 = vst.msk [vmem:[#allocation2 + $0x10] sm:$0xf] %vm447_vm6, %v435_v26  ;;  %v433_v28 = vpop.permute.xlu1 %432 }
  0xac   : > { %451 = vst.msk [vmem:[#allocation2 + $0xc] sm:$0xf] %vm447_vm6, %v433_v28 }
  0xae   : > { %v431_v29 = vpop.permute.xlu0 %430  ;;  %v728_v30 = vld [vmem:[#allocation2] sm:$0xff]  }
  0xaf   : > { %450 = vst.msk [vmem:[#allocation2 + $0x8] sm:$0xf] %vm447_vm6, %v431_v29  ;;  %696 = vmatprep.mubr.msk.bf16.mxu0 %vm519_vm7, %v728_v30 }
  0xb2   : > { %v439_v31 = vpop.permute.xlu0 %438  ;;  %v730_v32 = vld [vmem:[#allocation2 + $0x10] sm:$0xff]  }
  0xb3   : > { %454 = vst.msk [vmem:[#allocation2 + $0x18] sm:$0xf] %vm447_vm6, %v439_v31  ;;  %700 = vmatprep.mubr.msk.bf16.mxu1 %vm519_vm7, %v730_v32 }
  0xb6   : > { %v731_v33 = vld [vmem:[#allocation2 + $0x8] sm:$0xff]  }
  0xb7   : > { %697 = vmatmul.mubr.msk.bf16.vlgmr.msra.gmra.mrb[0].mxu0 %vm519_vm7, %v731_v33 }
  0xba   : > { %v732_v34 = vld [vmem:[#allocation2 + $0x18] ss:$0 sps:$4 sm:$0xff]  }
  0xbb   : > { %701 = vmatmul.mubr.msk.bf16.vlgmr.msra.gmra.mrb[0].mxu1 %vm519_vm7, %v732_v34 }
 0x18a   : > { %v698_v36 = vpop.f32.mrb[0].mxu0 }
 0x18b   : > { %v575_v37 = vadd.f32 %v698_v36, %v665_v35  ;;  %v566_v38 = vpop.f32.mrb[1].mxu0 }
 0x18c   : > { %v567_v39 = vadd.f32 %v665_v35, %v566_v38  ;;  %v699_v40 = vpop.f32.mrb[2].mxu0 }
 0x18d   : > { %598 = vst [vmem:[%s170_s7 + $0x10] sm:$0xff] %v575_v37  ;;  %v578_v41 = vadd.f32 %v699_v40, %v665_v35  ;;  %v569_v42 = vpop.f32.mrb[3].mxu0 }
 0x18e   : > { %596 = vst [vmem:[%s170_s7] sm:$0xff] %v567_v39  ;;  %v570_v43 = vadd.f32 %v665_v35, %v569_v42  ;;  %v702_v44 = vpop.f32.mrb[0].mxu1 }
 0x18f   : > { %599 = vst [vmem:[%s170_s7 + $0x18] sm:$0xff] %v578_v41  ;;  %v591_v45 = vadd.f32 %v702_v44, %v665_v35  ;;  %v582_v46 = vpop.f32.mrb[1].mxu1 }
 0x190   : > { %597 = vst [vmem:[%s170_s7 + $0x8] sm:$0xff] %v570_v43  ;;  %v583_v47 = vadd.f32 %v665_v35, %v582_v46  ;;  %v703_v48 = vpop.f32.mrb[2].mxu1 }
 0x191   : > { %602 = vst [vmem:[%s170_s7 + $0x30] sm:$0xff] %v591_v45  ;;  %v585_v49 = vpop.f32.mrb[3].mxu1 }
 0x192   : > { %600 = vst [vmem:[%s170_s7 + $0x20] sm:$0xff] %v583_v47  ;;  %v586_v50 = vadd.f32 %v665_v35, %v585_v49 }
 0x194   : > { %601 = vst [vmem:[%s170_s7 + $0x28] sm:$0xff] %v586_v50 }
 0x195 PF: > { %s13_s12 = sadd.s32 1, %s739_s12  }
 0x196   : > { %p10_p4 = scmp.ge.s32.totalorder %s13_s12, 4  }
 0x198   :  { %12 = sbr.rel (!%p10_p4) target bundleno = 1 (0x1), region = 62 }

</bundles_post_ra>
